<compile_context>
chip_gen: v7x
topology: tpu7x:2x2x1
jax: 0.10.0
libtpu: 0.0.40
codegen_flags: <defaults>
</compile_context>

<pallas_src>
import math
import numpy as np
import jax
import jax.numpy as jnp
from jax.experimental import pallas as pl
from jax.experimental.pallas import tpu as pltpu


# ----------------------------------------------------------------------------
# Trace-time (shape-only) helpers replicating the PyTorch module exactly
# ----------------------------------------------------------------------------
def _reflect_index(j, pad_lo, size):
    """ReflectionPad source index for output position j (mirror, no edge repeat).

    Negative pads fall through untouched (pure crop), matching F.pad semantics.
    """
    i = j - pad_lo
    if i < 0:
        i = -i
    elif i >= size:
        i = 2 * (size - 1) - i
    return i


def _padding_amounts(shape_x1, shape_x2_up):
    # Exact replica of the module's Python logic, including its quirks:
    #  * shape_x1[1] (channels) is compared against shape_x2[3] (upsampled width)
    #  * `lef_right % 2 is 0.0` is always False, so the "odd" split branch
    #    (left = int(d/2), right = d - left) is always taken.
    left = right = top = bot = 0
    if shape_x1[1] != shape_x2_up[3]:
        lef_right = shape_x1[3] - shape_x2_up[3]
        left = int(lef_right / 2)
        right = int(lef_right - left)
    if shape_x1[2] != shape_x2_up[2]:
        top_bot = shape_x1[2] - shape_x2_up[2]
        top = int(top_bot / 2)
        bot = int(top_bot - top)
    return left, right, top, bot


# ----------------------------------------------------------------------------
# Pallas kernel: one lane-dense one-hot selection matmul per batch tile
# ----------------------------------------------------------------------------
def _select_kernel(x_ref, st_ref, o_ref):
    # x_ref : (Bt, n_in)      flattened input pixels
    # st_ref: (n_in, n_out)   composed one-hot selection matrix S^T
    # o_ref : (Bt, n_out)     flattened output pixels (lane-dense last dim)
    o_ref[...] = jnp.dot(
        x_ref[...], st_ref[...], preferred_element_type=jnp.float32
    ).astype(o_ref.dtype)


# ----------------------------------------------------------------------------
# Public wrapper: UpsampleReshape_eval.forward(x1, x2)  (NCHW in, NCHW out)
# ----------------------------------------------------------------------------
def upsample_reshape_eval(x1, x2):
    N, C, H_in, W_in = x2.shape
    H_up, W_up = 2 * H_in, 2 * W_in
    left, right, top, bot = _padding_amounts(x1.shape, (N, C, H_up, W_up))
    H_out, W_out = H_up + top + bot, W_up + left + right

    # Reflection requires pad < size (negative pads crop, like F.pad).
    for p, s in ((left, W_up), (right, W_up), (top, H_up), (bot, H_up)):
        assert p < s, "reflection padding must be smaller than the padded dim"
    assert H_out > 0 and W_out > 0, "output spatial size must be positive"

    # Static output->input maps: reflect on the upsampled grid, then map back to
    # the original grid (nearest 2x -> floor div 2).
    rmap = np.array([_reflect_index(oh, top, H_up) // 2 for oh in range(H_out)])
    cmap = np.array([_reflect_index(ow, left, W_up) // 2 for ow in range(W_out)])

    n_in = H_in * W_in
    n_out = H_out * W_out
    B = N * C

    # Composed one-hot selection matrix S^T : (n_in, n_out); out = x_flat @ S^T.
    # One-hot selection is exact in any dtype, so build it in the input dtype.
    omap = (rmap[:, None] * W_in + cmap[None, :]).reshape(-1)  # (n_out,)
    st_np = np.zeros((n_in, n_out), np.float32)
    st_np[omap, np.arange(n_out)] = 1.0
    st = jnp.asarray(st_np, dtype=x2.dtype)
    # TODO(synk): for large spatial sizes (S^T above a few hundred KB) switch to
    # a row-gather route (scalar-prefetch rmap in the index_map) instead.

    itemsize = jnp.dtype(x2.dtype).itemsize
    # Batch-tile budget ~12 MiB for the double-buffered in+out blocks so the
    # kernel fits comfortably under every generation's scoped VMEM default.
    bt_budget = max(8, (12 << 20) // (2 * (n_in + n_out) * itemsize))
    if B <= bt_budget:
        Bt, B_pad = B, B
    else:
        Bt = max(8, (bt_budget // 8) * 8)       # keep the (8,128) sublane rule
        B_pad = int(math.ceil(B / Bt)) * Bt

    x_flat = x2.reshape(B, n_in)                 # contiguous reshape, free
    if B_pad != B:
        x_flat = jnp.pad(x_flat, ((0, B_pad - B), (0, 0)))

    grid = (B_pad // Bt,)
    vmem_need = 2 * Bt * (n_in + n_out) * itemsize + 2 * n_in * n_out * itemsize
    vmem_limit = int(min(max(vmem_need + (1 << 20), 32 << 20), 48 << 20))

    out_flat = pl.pallas_call(
        _select_kernel,
        out_shape=jax.ShapeDtypeStruct((B_pad, n_out), x2.dtype),
        grid=grid,
        in_specs=[
            pl.BlockSpec((Bt, n_in), lambda b: (b, 0)),
            pl.BlockSpec((n_in, n_out), lambda b: (0, 0)),
        ],
        out_specs=pl.BlockSpec((Bt, n_out), lambda b: (b, 0)),
        compiler_params=pltpu.CompilerParams(
            dimension_semantics=("parallel",),
            vmem_limit_bytes=vmem_limit,
        ),
        cost_estimate=pl.CostEstimate(
            flops=0,
            transcendentals=0,
            bytes_accessed=(B_pad * n_in + n_in * n_out + B_pad * n_out) * itemsize,
        ),
    )(x_flat, st)

    return out_flat[:B].reshape(N, C, H_out, W_out)


# ----------------------------------------------------------------------------
# Pure-JAX reference (XLA ops only) for the correctness check
# ----------------------------------------------------------------------------
def _upsample_reshape_eval_ref(x1, x2):
    up = jnp.repeat(jnp.repeat(x2, 2, axis=2), 2, axis=3)   # nearest 2x upsample
    left, right, top, bot = _padding_amounts(x1.shape, up.shape)
    return jnp.pad(up, ((0, 0), (0, 0), (top, bot), (left, right)), mode="reflect")


if __name__ == "__main__":
    key = jax.random.PRNGKey(0)
    k1, k2 = jax.random.split(key)

    batch, channels = 2, 4
    # x1 supplies the target spatial size (16x16); x2 is upsampled 7->14 and
    # reflection-padded by 1 on each side to reach 16x16.
    x1 = jax.random.normal(k1, (batch, channels, 16, 16), jnp.float32)
    x2 = jax.random.normal(k2, (batch, channels, 7, 7), jnp.float32)

    out = jax.block_until_ready(jax.jit(upsample_reshape_eval)(x1, x2))
    ref = jax.block_until_ready(_upsample_reshape_eval_ref(x1, x2))

    np.testing.assert_allclose(np.asarray(out), np.asarray(ref), rtol=1e-5, atol=1e-5)
    assert out.shape == (batch, channels, 16, 16)
    print("KERNEL_OK")
</pallas_src>

<mosaic_0001>
module attributes {stable_mosaic.version = 11 : i64} {
  func.func @_select_kernel(%arg0: i32, %arg1: memref<8x49xf32, #tpu.memory_space<vmem>>, %arg2: memref<49x256xf32, #tpu.memory_space<vmem>>, %arg3: memref<8x256xf32, #tpu.memory_space<vmem>>) attributes {dimension_semantics = [#tpu.dimension_semantics<parallel>], iteration_bounds = array<i64: 1>, scalar_prefetch = 0 : i64, scratch_operands = 0 : i64, tpu.core_type = #tpu.core_type<tc>, window_params = [{transform_indices = @transform_0, window_bounds = array<i64: 8, 49>}, {pipeline_mode = #tpu.pipeline_mode<synchronous>, transform_indices = @transform_1, window_bounds = array<i64: 49, 256>}, {transform_indices = @transform_2, window_bounds = array<i64: 8, 256>}]} {
    %c0 = arith.constant 0 : index
    %c0_0 = arith.constant 0 : index
    %0 = vector.load %arg1[%c0, %c0_0] : memref<8x49xf32, #tpu.memory_space<vmem>>, vector<8x49xf32>
    %c0_1 = arith.constant 0 : index
    %c0_2 = arith.constant 0 : index
    %1 = vector.load %arg2[%c0_1, %c0_2] : memref<49x256xf32, #tpu.memory_space<vmem>>, vector<49x256xf32>
    %cst = arith.constant dense<0.000000e+00> : vector<8x256xf32>
    %2 = tpu.matmul %0, %1, %cst {dimension_numbers = #tpu.dot_dimension_numbers<[1], [0], [0], [1], [0, 0, 1, 1], [], []>} : vector<8x49xf32>, vector<49x256xf32>, vector<8x256xf32> -> vector<8x256xf32>
    %c0_3 = arith.constant 0 : index
    %c0_4 = arith.constant 0 : index
    %3 = vector.load %arg3[%c0_3, %c0_4] : memref<8x256xf32, #tpu.memory_space<vmem>>, vector<8x256xf32>
    tpu.vector_store %arg3[%c0_3, %c0_4], %2 {strides = array<i32>} : memref<8x256xf32, #tpu.memory_space<vmem>>, vector<8x256xf32>,
    return
  }
  func.func @transform_0(%arg0: i32) -> (i32, i32) {
    %c0_i32 = arith.constant 0 : i32
    %c0_i32_0 = arith.constant 0 : i32
    return %arg0, %c0_i32 : i32, i32
  }
  func.func @transform_1(%arg0: i32) -> (i32, i32) {
    %c0_i32 = arith.constant 0 : i32
    %c0_i32_0 = arith.constant 0 : i32
    %c0_i32_1 = arith.constant 0 : i32
    return %c0_i32, %c0_i32_0 : i32, i32
  }
  func.func @transform_2(%arg0: i32) -> (i32, i32) {
    %c0_i32 = arith.constant 0 : i32
    %c0_i32_0 = arith.constant 0 : i32
    return %arg0, %c0_i32 : i32, i32
  }
}

</mosaic_0001>

<bundles_post_ra>
// kernel: upsample_reshape_eval.1
= control target key start
LH: loop header
LB: loop body
LE: loop exit
PB: predicated region body
PF: predicated region fallthrough
CT: control target
= control target key end

     0   :  { %v130_v3 = vmov 0.0   ;;  %vm30_vm0 = vcmask 1040384   ;;  %vm26_vm1 = vcmask 400384   ;;  %s197_s1 = inlined_call_operand.vmem [shape: f32[49,256], index: 1, kind: input, shape index: {}]   ;;  %s198_s0 = inlined_call_operand.vmem [shape: f32[8,49], index: 0, kind: input, shape index: {}]   ;;  %s199_s2 = inlined_call_operand.vmem [shape: f32[8,256], index: 2, kind: output, shape index: {}]  }
   0x1   :  { %v13_v0 = vld [vmem:[%s197_s1 + $0x8] sm:$0xff]  ;;  %v15_v1 = vld [vmem:[%s197_s1 + $0x18] sm:$0xff]  ;;  %v12_v2 = vld [vmem:[%s197_s1] sm:$0xff]  ;;  %101 = vmatprep.mubr.f32.mxu0 %v130_v3 }
   0x2   :  { %v117_v4 = vpack.c.bf16 %v15_v1, %v13_v0  ;;  %v14_v5 = vld [vmem:[%s197_s1 + $0x10] sm:$0xff]  ;;  %v17_v6 = vld [vmem:[%s197_s1 + $0x28] sm:$0xff]  ;;  %v19_v7 = vld [vmem:[%s197_s1 + $0x38] sm:$0xff] }
   0x3   :  { %v119_v8 = vpack.c.bf16 %v14_v5, %v12_v2  ;;  %v121_v9 = vpack.c.bf16 %v19_v7, %v17_v6  ;;  %v16_v10 = vld [vmem:[%s197_s1 + $0x20] sm:$0xff]  ;;  %v18_v11 = vld [vmem:[%s197_s1 + $0x30] sm:$0xff]  ;;  %v21_v12 = vld [vmem:[%s197_s1 + $0x48] sm:$0xff] }
   0x4   :  { %118 = vmatprep.subr.bf16.mxu0 %v117_v4  ;;  %v23_v13 = vld [vmem:[%s197_s1 + $0x58] sm:$0xff]  ;;  %v123_v14 = vpack.c.bf16 %v18_v11, %v16_v10  ;;  %v20_v16 = vld [vmem:[%s197_s1 + $0x40] sm:$0xff]  ;;  %v22_v17 = vld [vmem:[%s197_s1 + $0x50] sm:$0xff] }
   0x5   :  { %120 = vmatpush1.bf16.msra.mxu0 %v119_v8  ;;  %v125_v15 = vpack.c.bf16 %v23_v13, %v21_v12  ;;  %v127_v18 = vpack.c.bf16 %v22_v17, %v20_v16  ;;  %v25_v19 = vld [vmem:[%s197_s1 + $0x68] sm:$0x1]  ;;  %v24_v20 = vld [vmem:[%s197_s1 + $0x60] sm:$0x1] }
   0x6   :  { %122 = vmatprep.subr.bf16.mxu0 %v121_v9  ;;  %v11_v21 = vld [vmem:[%s198_s0] sm:$0xff] }
   0x9   :  { %124 = vmatpush1.bf16.msra.mxu0 %v123_v14 }
   0xa   :  { %126 = vmatprep.subr.bf16.mxu0 %v125_v15 }
   0xd   :  { %128 = vmatpush1.bf16.msra.mxu0 %v127_v18 }
   0xe   :  { %114 = vmatprep.subr.msk.mxu0 %vm30_vm0, %v25_v19 }
  0x11   :  { %115 = vmatpush1.msk.msra.mxu0 %vm30_vm0, %v24_v20 }
  0x12   :  { %116 = vmatmul.mubr.msk.f32.vlgmr.msra.gmra.mrb[0].mxu0 %vm26_vm1, %v11_v21 }
  0xe5   :  { %v103_v22 = vpop.f32.mrb[0].mxu0 }
  0xe6   :  { %108 = vst [vmem:[%s199_s2] sm:$0xff] %v103_v22  ;;  %v105_v23 = vpop.f32.mrb[1].mxu0 }
  0xe7   :  { %109 = vst [vmem:[%s199_s2 + $0x8] sm:$0xff] %v105_v23 }

</bundles_post_ra>
